<compile_context>
chip_gen: v7x
topology: tpu7x:2x2x1
jax: 0.10.0
libtpu: 0.0.40
codegen_flags: <defaults>
</compile_context>

<pallas_src>
import functools

import jax
import jax.numpy as jnp
from jax.experimental import pallas as pl
from jax.experimental.pallas import tpu as pltpu


def _mixer_kernel(xs_ref, xq_ref, w1s_ref, w1q_ref, b1_ref,
                  w2_ref, b2_ref, w3_ref, b3_ref, o_ref):
    """Fused 3-layer MLP on one column tile, feature-major layout.

    Activations: (features, tile_cols).  Weights: (out_features, in_features).
    Biases: (out_features, 1), broadcast over lanes.  fp32 accumulation.
    """
    # Layer 1 (split contraction == concat([states, qs]) @ W1) + bias + ReLU
    h1 = (jnp.dot(w1s_ref[...], xs_ref[...], preferred_element_type=jnp.float32)
          + jnp.dot(w1q_ref[...], xq_ref[...], preferred_element_type=jnp.float32)
          + b1_ref[...])
    h1 = jnp.maximum(h1, 0.0)
    # Layer 2 + bias + ReLU
    h2 = jnp.dot(w2_ref[...], h1.astype(w2_ref.dtype),
                 preferred_element_type=jnp.float32) + b2_ref[...]
    h2 = jnp.maximum(h2, 0.0)
    # Layer 3 (no activation)
    out = jnp.dot(w3_ref[...], h2.astype(w3_ref.dtype),
                  preferred_element_type=jnp.float32) + b3_ref[...]
    o_ref[...] = out.astype(o_ref.dtype)


def _round_down(x, m):
    return (x // m) * m


def dres_central_mixer_forward(agent_qs, states, params, *, target=True,
                               n_agents, n_quantiles, n_target_quantiles,
                               tile_cols=1024, compute_dtype=jnp.float32):
    """JAX wrapper reproducing DRESCentralMixer.forward semantics.

    agent_qs : (B, T, n_agents, n_rnd_quantiles) float32
    states   : (B, T, state_dim)                 float32
    params   : (w1, b1, w2, b2, w3, b3) with w: (in, out), b: (1, out)
    returns  : (B, T, 1, n_rnd_quantiles)        float32
    """
    batch_size, episode_length = agent_qs.shape[0], agent_qs.shape[1]
    state_dim = states.shape[-1]
    n_rnd_quantiles = n_target_quantiles if target else n_quantiles
    assert agent_qs.shape == (batch_size, episode_length, n_agents, n_rnd_quantiles)
    assert states.shape == (batch_size, episode_length, state_dim)

    rows = batch_size * episode_length
    nq_dim = n_agents * n_rnd_quantiles

    w1, b1, w2, b2, w3, b3 = params
    embed_dim = w1.shape[1]
    out_dim = w3.shape[1]
    assert w1.shape[0] == state_dim + nq_dim
    assert out_dim == n_rnd_quantiles, "final Linear width must equal n_rnd_quantiles"

    # Feature-major activations: B*T rides the lane axis (lane-dense output).
    xs = states.reshape(rows, state_dim).T.astype(compute_dtype)          # (state_dim, rows)
    xq = agent_qs.reshape(rows, nq_dim).T.astype(compute_dtype)           # (nq_dim, rows)

    # Transposed weights; W1 split to fuse the concat into the kernel.
    w1_s = w1[:state_dim].T.astype(compute_dtype)                         # (embed, state_dim)
    w1_q = w1[state_dim:].T.astype(compute_dtype)                         # (embed, nq_dim)
    w2_t = w2.T.astype(compute_dtype)                                     # (embed, embed)
    w3_t = w3.T.astype(compute_dtype)                                     # (out, embed)
    b1_c = b1.reshape(-1, 1).astype(jnp.float32)                          # (embed, 1)
    b2_c = b2.reshape(-1, 1).astype(jnp.float32)                          # (embed, 1)
    b3_c = b3.reshape(-1, 1).astype(jnp.float32)                          # (out, 1)

    # Tile choice: as large as requested, but lane-aligned (multiple of 128)
    # and capped near rows/2 so big workloads keep >=2 parallel grid steps
    # (v7x megacore).  Tiny demo shapes just get one 128-wide tile.
    tile_cols = min(tile_cols, max(128, _round_down(pl.cdiv(rows, 2), 128)))
    rows_p = pl.cdiv(rows, tile_cols) * tile_cols
    if rows_p != rows:
        pad = rows_p - rows
        xs = jnp.pad(xs, ((0, 0), (0, pad)))
        xq = jnp.pad(xq, ((0, 0), (0, pad)))

    grid = (rows_p // tile_cols,)
    wmap = lambda i: (0, 0)   # weights/biases resident across the grid
    xmap = lambda i: (0, i)   # activations/output tiled along columns

    itemsize = jnp.dtype(compute_dtype).itemsize
    flops = 2 * rows_p * (state_dim * embed_dim + nq_dim * embed_dim
                          + embed_dim * embed_dim + embed_dim * out_dim)
    bytes_accessed = (rows_p * (state_dim + nq_dim) * itemsize     # inputs
                      + rows_p * out_dim * 4                       # output (fp32)
                      + (w1_s.size + w1_q.size + w2_t.size + w3_t.size) * itemsize
                      + (b1_c.size + b2_c.size + b3_c.size) * 4)

    out = pl.pallas_call(
        _mixer_kernel,
        out_shape=jax.ShapeDtypeStruct((out_dim, rows_p), jnp.float32),
        grid_spec=pltpu.PrefetchScalarGridSpec(
            num_scalar_prefetch=0,
            grid=grid,
            in_specs=[
                pl.BlockSpec((state_dim, tile_cols), xmap),   # states (feature-major)
                pl.BlockSpec((nq_dim, tile_cols), xmap),      # agent_qs (feature-major)
                pl.BlockSpec((embed_dim, state_dim), wmap),   # W1_s^T
                pl.BlockSpec((embed_dim, nq_dim), wmap),      # W1_q^T
                pl.BlockSpec((embed_dim, 1), wmap),           # b1
                pl.BlockSpec((embed_dim, embed_dim), wmap),   # W2^T
                pl.BlockSpec((embed_dim, 1), wmap),           # b2
                pl.BlockSpec((out_dim, embed_dim), wmap),     # W3^T
                pl.BlockSpec((out_dim, 1), wmap),             # b3
            ],
            out_specs=pl.BlockSpec((out_dim, tile_cols), xmap),
        ),
        compiler_params=pltpu.CompilerParams(
            dimension_semantics=("parallel",)),
        cost_estimate=pl.CostEstimate(flops=flops, transcendentals=0,
                                      bytes_accessed=bytes_accessed),
    )(xs, xq, w1_s, w1_q, b1_c, w2_t, b2_c, w3_t, b3_c)

    # Drop padding, back to row-major, reshape like the torch module.
    out = out[:, :rows].T
    return out.reshape(batch_size, episode_length, 1, n_rnd_quantiles)


def init_params(key, input_dim, embed_dim, out_dim):
    """Deterministic init mirroring the nn.Linear shapes of the torch module."""
    ks = jax.random.split(key, 6)

    def lin(kw, kb, fan_in, fan_out):
        bound = 1.0 / jnp.sqrt(fan_in)
        w = jax.random.uniform(kw, (fan_in, fan_out), jnp.float32, -bound, bound)
        b = jax.random.uniform(kb, (1, fan_out), jnp.float32, -bound, bound)
        return w, b

    w1, b1 = lin(ks[0], ks[1], input_dim, embed_dim)
    w2, b2 = lin(ks[2], ks[3], embed_dim, embed_dim)
    w3, b3 = lin(ks[4], ks[5], embed_dim, out_dim)
    return (w1, b1, w2, b2, w3, b3)


def _reference_forward(agent_qs, states, params):
    """Pure-JAX reference for correctness checking."""
    B, T = agent_qs.shape[0], agent_qs.shape[1]
    n_q = agent_qs.shape[-1]
    x = jnp.concatenate(
        [states.reshape(B * T, -1), agent_qs.reshape(B * T, -1)], axis=1)
    w1, b1, w2, b2, w3, b3 = params
    h = jnp.maximum(x @ w1 + b1, 0.0)
    h = jnp.maximum(h @ w2 + b2, 0.0)
    return (h @ w3 + b3).reshape(B, T, 1, n_q)


if __name__ == "__main__":
    # Small, module-consistent shapes.
    batch_size = 2
    episode_length = 8
    n_agents = 4
    n_quantiles = 8
    n_target_quantiles = 8
    state_dim = 12                       # e.g. args.state_shape = (12,)
    embed_dim = 32                       # args.central_mixing_embed_dim
    input_dim = n_agents * n_target_quantiles + state_dim

    key = jax.random.PRNGKey(0)
    k_qs, k_st, k_p = jax.random.split(key, 3)

    agent_qs = jax.random.normal(
        k_qs, (batch_size, episode_length, n_agents, n_target_quantiles),
        dtype=jnp.float32)
    states = jax.random.normal(
        k_st, (batch_size, episode_length, state_dim), dtype=jnp.float32)
    params = init_params(k_p, input_dim, embed_dim, n_target_quantiles)

    fwd = functools.partial(
        dres_central_mixer_forward,
        target=True,
        n_agents=n_agents,
        n_quantiles=n_quantiles,
        n_target_quantiles=n_target_quantiles,
        tile_cols=1024,                  # large tiles; wrapper pads & caps as needed
        compute_dtype=jnp.float32,       # set jnp.bfloat16 on v6e/v7x for ~2x HBM savings
    )

    out = fwd(agent_qs, states, params)
    out = jax.block_until_ready(out)

    ref = _reference_forward(agent_qs, states, params)
    assert out.shape == (batch_size, episode_length, 1, n_target_quantiles)
    assert jnp.allclose(out, ref, atol=1e-5, rtol=1e-5)

    print("KERNEL_OK")
</pallas_src>

<mosaic_0001>
module attributes {stable_mosaic.version = 11 : i64} {
  func.func @_mixer_kernel(%arg0: i32, %arg1: memref<12x128xf32, #tpu.memory_space<vmem>>, %arg2: memref<32x128xf32, #tpu.memory_space<vmem>>, %arg3: memref<32x12xf32, #tpu.memory_space<vmem>>, %arg4: memref<32x32xf32, #tpu.memory_space<vmem>>, %arg5: memref<32x1xf32, #tpu.memory_space<vmem>>, %arg6: memref<32x32xf32, #tpu.memory_space<vmem>>, %arg7: memref<32x1xf32, #tpu.memory_space<vmem>>, %arg8: memref<8x32xf32, #tpu.memory_space<vmem>>, %arg9: memref<8x1xf32, #tpu.memory_space<vmem>>, %arg10: memref<8x128xf32, #tpu.memory_space<vmem>>) attributes {dimension_semantics = [#tpu.dimension_semantics<parallel>], iteration_bounds = array<i64: 1>, scalar_prefetch = 0 : i64, scratch_operands = 0 : i64, tpu.core_type = #tpu.core_type<tc>, window_params = [{transform_indices = @transform_0, window_bounds = array<i64: 12, 128>}, {transform_indices = @transform_1, window_bounds = array<i64: 32, 128>}, {pipeline_mode = #tpu.pipeline_mode<synchronous>, transform_indices = @transform_2, window_bounds = array<i64: 32, 12>}, {pipeline_mode = #tpu.pipeline_mode<synchronous>, transform_indices = @transform_3, window_bounds = array<i64: 32, 32>}, {pipeline_mode = #tpu.pipeline_mode<synchronous>, transform_indices = @transform_4, window_bounds = array<i64: 32, 1>}, {pipeline_mode = #tpu.pipeline_mode<synchronous>, transform_indices = @transform_5, window_bounds = array<i64: 32, 32>}, {pipeline_mode = #tpu.pipeline_mode<synchronous>, transform_indices = @transform_6, window_bounds = array<i64: 32, 1>}, {pipeline_mode = #tpu.pipeline_mode<synchronous>, transform_indices = @transform_7, window_bounds = array<i64: 8, 32>}, {pipeline_mode = #tpu.pipeline_mode<synchronous>, transform_indices = @transform_8, window_bounds = array<i64: 8, 1>}, {transform_indices = @transform_9, window_bounds = array<i64: 8, 128>}]} {
    %c0 = arith.constant 0 : index
    %c0_0 = arith.constant 0 : index
    %0 = vector.load %arg3[%c0, %c0_0] : memref<32x12xf32, #tpu.memory_space<vmem>>, vector<32x12xf32>
    %c0_1 = arith.constant 0 : index
    %c0_2 = arith.constant 0 : index
    %1 = vector.load %arg1[%c0_1, %c0_2] : memref<12x128xf32, #tpu.memory_space<vmem>>, vector<12x128xf32>
    %cst = arith.constant dense<0.000000e+00> : vector<32x128xf32>
    %2 = tpu.matmul %0, %1, %cst {dimension_numbers = #tpu.dot_dimension_numbers<[1], [0], [0], [1], [0, 0, 1, 1], [], []>} : vector<32x12xf32>, vector<12x128xf32>, vector<32x128xf32> -> vector<32x128xf32>
    %c0_3 = arith.constant 0 : index
    %c0_4 = arith.constant 0 : index
    %3 = vector.load %arg4[%c0_3, %c0_4] : memref<32x32xf32, #tpu.memory_space<vmem>>, vector<32x32xf32>
    %c0_5 = arith.constant 0 : index
    %c0_6 = arith.constant 0 : index
    %4 = vector.load %arg2[%c0_5, %c0_6] : memref<32x128xf32, #tpu.memory_space<vmem>>, vector<32x128xf32>
    %cst_7 = arith.constant dense<0.000000e+00> : vector<32x128xf32>
    %5 = tpu.matmul %3, %4, %cst_7 {dimension_numbers = #tpu.dot_dimension_numbers<[1], [0], [0], [1], [0, 0, 1, 1], [], []>} : vector<32x32xf32>, vector<32x128xf32>, vector<32x128xf32> -> vector<32x128xf32>
    %6 = arith.addf %2, %5 : vector<32x128xf32>
    %c0_8 = arith.constant 0 : index
    %c0_9 = arith.constant 0 : index
    %7 = vector.load %arg5[%c0_8, %c0_9] : memref<32x1xf32, #tpu.memory_space<vmem>>, vector<32x1xf32>
    %8 = vector.broadcast %7 : vector<32x1xf32> to vector<32x128xf32>
    %9 = arith.addf %6, %8 : vector<32x128xf32>
    %cst_10 = arith.constant 0.000000e+00 : f32
    %10 = vector.broadcast %cst_10 : f32 to vector<32x128xf32>
    %11 = arith.maximumf %9, %10 : vector<32x128xf32>
    %c0_11 = arith.constant 0 : index
    %c0_12 = arith.constant 0 : index
    %12 = vector.load %arg6[%c0_11, %c0_12] : memref<32x32xf32, #tpu.memory_space<vmem>>, vector<32x32xf32>
    %cst_13 = arith.constant dense<0.000000e+00> : vector<32x128xf32>
    %13 = tpu.matmul %12, %11, %cst_13 {dimension_numbers = #tpu.dot_dimension_numbers<[1], [0], [0], [1], [0, 0, 1, 1], [], []>} : vector<32x32xf32>, vector<32x128xf32>, vector<32x128xf32> -> vector<32x128xf32>
    %c0_14 = arith.constant 0 : index
    %c0_15 = arith.constant 0 : index
    %14 = vector.load %arg7[%c0_14, %c0_15] : memref<32x1xf32, #tpu.memory_space<vmem>>, vector<32x1xf32>
    %15 = vector.broadcast %14 : vector<32x1xf32> to vector<32x128xf32>
    %16 = arith.addf %13, %15 : vector<32x128xf32>
    %cst_16 = arith.constant 0.000000e+00 : f32
    %17 = vector.broadcast %cst_16 : f32 to vector<32x128xf32>
    %18 = arith.maximumf %16, %17 : vector<32x128xf32>
    %c0_17 = arith.constant 0 : index
    %c0_18 = arith.constant 0 : index
    %19 = vector.load %arg8[%c0_17, %c0_18] : memref<8x32xf32, #tpu.memory_space<vmem>>, vector<8x32xf32>
    %cst_19 = arith.constant dense<0.000000e+00> : vector<8x128xf32>
    %20 = tpu.matmul %19, %18, %cst_19 {dimension_numbers = #tpu.dot_dimension_numbers<[1], [0], [0], [1], [0, 0, 1, 1], [], []>} : vector<8x32xf32>, vector<32x128xf32>, vector<8x128xf32> -> vector<8x128xf32>
    %c0_20 = arith.constant 0 : index
    %c0_21 = arith.constant 0 : index
    %21 = vector.load %arg9[%c0_20, %c0_21] : memref<8x1xf32, #tpu.memory_space<vmem>>, vector<8x1xf32>
    %22 = vector.broadcast %21 : vector<8x1xf32> to vector<8x128xf32>
    %23 = arith.addf %20, %22 : vector<8x128xf32>
    %c0_22 = arith.constant 0 : index
    %c0_23 = arith.constant 0 : index
    %24 = vector.load %arg10[%c0_22, %c0_23] : memref<8x128xf32, #tpu.memory_space<vmem>>, vector<8x128xf32>
    tpu.vector_store %arg10[%c0_22, %c0_23], %23 {strides = array<i32>} : memref<8x128xf32, #tpu.memory_space<vmem>>, vector<8x128xf32>,
    return
  }
  func.func @transform_0(%arg0: i32) -> (i32, i32) {
    %c0_i32 = arith.constant 0 : i32
    %c0_i32_0 = arith.constant 0 : i32
    return %c0_i32, %arg0 : i32, i32
  }
  func.func @transform_1(%arg0: i32) -> (i32, i32) {
    %c0_i32 = arith.constant 0 : i32
    %c0_i32_0 = arith.constant 0 : i32
    return %c0_i32, %arg0 : i32, i32
  }
  func.func @transform_2(%arg0: i32) -> (i32, i32) {
    %c0_i32 = arith.constant 0 : i32
    %c0_i32_0 = arith.constant 0 : i32
    %c0_i32_1 = arith.constant 0 : i32
    return %c0_i32, %c0_i32_0 : i32, i32
  }
  func.func @transform_3(%arg0: i32) -> (i32, i32) {
    %c0_i32 = arith.constant 0 : i32
    %c0_i32_0 = arith.constant 0 : i32
    %c0_i32_1 = arith.constant 0 : i32
    return %c0_i32, %c0_i32_0 : i32, i32
  }
  func.func @transform_4(%arg0: i32) -> (i32, i32) {
    %c0_i32 = arith.constant 0 : i32
    %c0_i32_0 = arith.constant 0 : i32
    %c0_i32_1 = arith.constant 0 : i32
    return %c0_i32, %c0_i32_0 : i32, i32
  }
  func.func @transform_5(%arg0: i32) -> (i32, i32) {
    %c0_i32 = arith.constant 0 : i32
    %c0_i32_0 = arith.constant 0 : i32
    %c0_i32_1 = arith.constant 0 : i32
    return %c0_i32, %c0_i32_0 : i32, i32
  }
  func.func @transform_6(%arg0: i32) -> (i32, i32) {
    %c0_i32 = arith.constant 0 : i32
    %c0_i32_0 = arith.constant 0 : i32
    %c0_i32_1 = arith.constant 0 : i32
    return %c0_i32, %c0_i32_0 : i32, i32
  }
  func.func @transform_7(%arg0: i32) -> (i32, i32) {
    %c0_i32 = arith.constant 0 : i32
    %c0_i32_0 = arith.constant 0 : i32
    %c0_i32_1 = arith.constant 0 : i32
    return %c0_i32, %c0_i32_0 : i32, i32
  }
  func.func @transform_8(%arg0: i32) -> (i32, i32) {
    %c0_i32 = arith.constant 0 : i32
    %c0_i32_0 = arith.constant 0 : i32
    %c0_i32_1 = arith.constant 0 : i32
    return %c0_i32, %c0_i32_0 : i32, i32
  }
  func.func @transform_9(%arg0: i32) -> (i32, i32) {
    %c0_i32 = arith.constant 0 : i32
    %c0_i32_0 = arith.constant 0 : i32
    return %c0_i32, %arg0 : i32, i32
  }
}

</mosaic_0001>

<bundles_post_ra>
// kernel: tpu_custom_call.1
= control target key start
LH: loop header
LB: loop body
LE: loop exit
PB: predicated region body
PF: predicated region fallthrough
CT: control target
= control target key end

     0   :  { %vm47_vm0 = vcmask 261120   ;;  %v657_v9 = vmov 0   ;;  %vm158_vm1 = vcmask 1043456   ;;  %vm658_vm2 = vmmov 1   ;;  %s822_s0 = inlined_call_operand.vmem [shape: f32[12,128], index: 0, kind: input, shape index: {}]   ;;  %s823_s1 = inlined_call_operand.vmem [shape: f32[32,128], index: 1, kind: input, shape index: {}]   ;;  %s824_s2 = inlined_call_operand.vmem [shape: f32[32,12], index: 2, kind: input, shape index: {}]   ;;  %s825_s3 = inlined_call_operand.vmem [shape: f32[32,32], index: 3, kind: input, shape index: {}]   ;;  %s826_s4 = inlined_call_operand.vmem [shape: f32[32,1], index: 4, kind: input, shape index: {}]   ;;  %s827_s5 = inlined_call_operand.vmem [shape: f32[32,32], index: 5, kind: input, shape index: {}]   ;;  %s828_s6 = inlined_call_operand.vmem [shape: f32[32,1], index: 6, kind: input, shape index: {}]   ;;  %s829_s7 = inlined_call_operand.vmem [shape: f32[8,32], index: 7, kind: input, shape index: {}]   ;;  %s830_s8 = inlined_call_operand.vmem [shape: f32[8,1], index: 8, kind: input, shape index: {}]   ;;  %s831_s9 = inlined_call_operand.hbm [shape: f32[8,128], index: 9, kind: output, shape index: {}]  }
   0x1   :  { %v43_v0 = vld [vmem:[%s823_s1] sm:$0xff]  ;;  %v44_v1 = vld [vmem:[%s823_s1 + $0x8] sm:$0xff]  ;;  %v45_v2 = vld [vmem:[%s823_s1 + $0x10] sm:$0xff]  ;;  %631 = vset.pattern.permute.xlu0 %v657_v9  ;;  %632 = vset.pattern.permute.xlu1 %v657_v9 }
   0x2   :  { %v593_v3 = vpack.c.bf16 %v44_v1, %v43_v0  ;;  %v46_v4 = vld [vmem:[%s823_s1 + $0x18] sm:$0xff]  ;;  %v39_v5 = vld [vmem:[%s825_s3] sm:$0xff]  ;;  %v38_v8 = vld [vmem:[%s822_s0 + $0x8] sm:$0xf] }
   0x3   :  { %v597_v6 = vpack.c.bf16 %v46_v4, %v45_v2  ;;  %552 = vmatprep.mubr.msk.f32.mxu0 %vm47_vm0, %v39_v5  ;;  %v37_v7 = vld [vmem:[%s822_s0] sm:$0xff]  ;;  %v249_v12 = vld [vmem:[%s826_s4 + $0x10] sm:$0xff]  ;;  %vm602_vm3 = vmpackc.low %vm158_vm1, %vm658_vm2 }
   0x4   :  { %594 = vmatprep.subr.bf16.mxu0 %v593_v3  ;;  %v601_v10 = vpack.c.bf16 %v38_v8, %v37_v7  ;;  %v247_v11 = vld [vmem:[%s826_s4] sm:$0xff]  ;;  %263 = vperm.xlu1 %632, %v249_v12   ;;  %v248_v13 = vld [vmem:[%s826_s4 + $0x8] sm:$0xff]  ;;  %v250_v14 = vld [vmem:[%s826_s4 + $0x18] sm:$0xff] }
   0x5   :  { %596 = vmatpush3.bf16.msra.mxu0 %v593_v3  ;;  %253 = vperm.xlu0 %631, %v247_v11   ;;  %v40_v15 = vld [vmem:[%s825_s3 + $0x8] sm:$0xff] }
   0x6   :  { %598 = vmatprep.subr.bf16.mxu0 %v597_v6 }
   0x9   :  { %600 = vmatpush3.bf16.msra.mxu0 %v597_v6 }
   0xa   :  { %14 = vsyncpa [#allocation3], 0  ;;  %603 = vmatprep.subr.msk.bf16.mxu0 %vm602_vm3, %v601_v10  ;;  %v41_v16 = vld [vmem:[%s825_s3 + $0x10] sm:$0xff]  ;;  %258 = vperm.xlu0 %631, %v248_v13   ;;  %v283_v17 = vld [vmem:[%s828_s6] sm:$0xff]  ;;  %vm145_vm4 = vcmask 97280   ;;  %v659_v49 = vmov 0.0|0.0  }
   0xb   :  { %268 = vperm.xlu1 %632, %v250_v14   ;;  %v284_v18 = vld [vmem:[%s828_s6 + $0x8] sm:$0xff]  ;;  %v42_v19 = vld [vmem:[%s825_s3 + $0x18] sm:$0xff]  ;;  %v33_v20 = vld [vmem:[%s824_s2] sm:$0xff]  ;;  %vm660_vm5 = vmmov 0   ;;  %v661_v50 = vmov 0.0   ;;  %s662_s13 = smov [#allocation2]  }
   0xc   :  { %553 = vmatmul.mubr.msk.f32.vlgmr.msra.gmra.mrb[0].mxu0 %vm47_vm0, %v40_v15  ;;  %v285_v21 = vld [vmem:[%s828_s6 + $0x10] sm:$0xff]  ;;  %v286_v22 = vld [vmem:[%s828_s6 + $0x18] sm:$0xff]  ;;  %v34_v23 = vld [vmem:[%s824_s2 + $0x8] sm:$0xff]  ;;  %s495_s4 = sshll.u32 %s662_s13, 4  ;;  %s496_s4 = int_to_ptr.vmem [resolvable:$true] %s495_s4 }
   0xd   :  { %606 = vmatpush3.bf16.msk.msra.mxu0 %vm602_vm3, %v601_v10  ;;  %555 = vmatprep.mubr.msk.f32.mxu0 %vm47_vm0, %v41_v16  ;;  %v35_v24 = vld [vmem:[%s824_s2 + $0x10] sm:$0xff]  ;;  %v409_v25 = vld [vmem:[%s830_s8] sm:$0xff]  ;;  %v36_v26 = vld [vmem:[%s824_s2 + $0x18] sm:$0xff]  ;;  %s633_s14 = scalar_lea.vmem %s496_s4, 128  ;;  %p638_p1 = scmp.lt.s32.totalorder %s496_s4, %s496_s4 }
   0xe   :  { %289 = vperm.xlu0 %631, %v283_v17   ;;  %v279_v27 = vld [vmem:[%s827_s5] sm:$0xff]  ;;  %v280_v46 = vld [vmem:[%s827_s5 + $0x8] sm:$0xff]  ;;  %v281_v47 = vld [vmem:[%s827_s5 + $0x10] sm:$0xff]  ;;  %p634_p0 = scmp.ne.s32.totalorder %s496_s4, %s633_s14  ;;  %p639_p2 = scmp.lt.s32.totalorder %s633_s14, %s633_s14 }
   0xf   :  { %294 = vperm.xlu1 %632, %v284_v18   ;;  %576 = vmatprep.mubr.msk.f32.mxu1 %vm47_vm0, %v279_v27  ;;  %v282_v48 = vld [vmem:[%s827_s5 + $0x18] sm:$0xff]  ;;  %v408_v5 = vld [vmem:[%s829_s7] sm:$0xff] }
  0x10   :  { %556 = vmatmul.mubr.msk.f32.gmra.mrb[2].mxu0 %vm47_vm0, %v42_v19  ;;  %p640_p3 = por %p639_p2, %p638_p1 }
  0x11   :  { %562 = vmatprep.mubr.msk.f32.mxu0 %vm145_vm4, %v33_v20 }
  0x12   :  { %299 = vperm.xlu0 %631, %v285_v21   ;;  %p641_p4 = pnand %p640_p3, %p634_p0 }
  0x13   :  { %304 = vperm.xlu1 %632, %v286_v22  }
  0x14   :  { %563 = vmatmul.mubr.msk.f32.vlgmr.msra.gmra.mrb[0].mxu0 %vm145_vm4, %v34_v23 }
  0x15   :  { %565 = vmatprep.mubr.msk.f32.mxu0 %vm145_vm4, %v35_v24 }
  0x16   :  { %412 = vperm.xlu0 %631, %v409_v25  }
  0x18   :  { %566 = vmatmul.mubr.msk.f32.gmra.mrb[2].mxu0 %vm145_vm4, %v36_v26 }
  0x83   :  { %v264_v29 = vpop.permute.xlu1 %263 }
  0x84   :  { %v254_v28 = vpop.permute.xlu0 %253 }
  0x89   :  { %v259_v30 = vpop.permute.xlu0 %258 }
  0x8a   :  { %v269_v36 = vpop.permute.xlu1 %268 }
  0x8d   :  { %v290_v52 = vpop.permute.xlu0 %289 }
  0x8e   :  { %v295_v51 = vpop.permute.xlu1 %294 }
  0x91   :  { %v300_v61 = vpop.permute.xlu0 %299 }
  0x92   :  { %v305_v58 = vpop.permute.xlu1 %304 }
  0x95   :  { %v413_v6 = vpop.permute.xlu0 %412 }
  0xe7   :  { %v564_v31 = vpop.f32.mrb[0].mxu0 }
  0xe8   :  { %v272_v32 = vadd.f32 %v564_v31, %v259_v30  ;;  %v228_v33 = vpop.f32.mrb[1].mxu0 }
  0xe9   :  { %v271_v34 = vadd.f32 %v254_v28, %v228_v33 }
  0xea   :  { %v276_v35 = vmax.f32 %v272_v32, 0.0 }
  0xeb   :  { %v275_v37 = vmax.f32 %v271_v34, 0.0  ;;  %v567_v38 = vpop.f32.mrb[2].mxu0 }
  0xec   :  { %v274_v39 = vadd.f32 %v567_v38, %v269_v36  ;;  %v238_v40 = vpop.f32.mrb[3].mxu0 }
  0xed   :  { %v273_v41 = vadd.f32 %v264_v29, %v238_v40  ;;  %v607_v42 = vpack.c.bf16 %v276_v35, %v275_v37 }
  0xee   :  { %v278_v43 = vmax.f32 %v274_v39, 0.0 }
  0xef   :  { %v277_v44 = vmax.f32 %v273_v41, 0.0  ;;  %608 = vmatprep.subr.bf16.mxu1 %v607_v42 }
  0xf0   :  { %610 = vmatpush3.bf16.msra.mxu1 %v607_v42 }
  0xf1   :  { %v611_v45 = vpack.c.bf16 %v278_v43, %v277_v44 }
  0xf3   :  { %612 = vmatprep.subr.bf16.mxu1 %v611_v45 }
  0xf4   :  { %614 = vmatpush3.bf16.msra.mxu1 %v611_v45 }
  0xf5   :  { %615 = vmatprep.subr.bf16.mxu1 %v659_v49 }
  0xf7   :  { %577 = vmatmul.mubr.msk.f32.vlgmr.msra.gmra.mrb[0].mxu1 %vm47_vm0, %v280_v46 }
  0xf8   :  { %579 = vmatprep.mubr.msk.f32.mxu1 %vm47_vm0, %v281_v47 }
  0xfb   :  { %580 = vmatmul.mubr.msk.f32.gmra.mrb[2].mxu1 %vm47_vm0, %v282_v48 }
  0xfc   :  { %590 = vmatprep.mubr.msk.f32.mxu1 %vm660_vm5, %v661_v50 }
 0x1ca   :  { %v578_v53 = vpop.f32.mrb[0].mxu1 }
 0x1cb   :  { %v391_v54 = vadd.f32 %v578_v53, %v295_v51  ;;  %v385_v55 = vpop.f32.mrb[1].mxu1 }
 0x1cc   :  { %v386_v56 = vadd.f32 %v385_v55, %v290_v52 }
 0x1cd   :  { %v405_v57 = vmax.f32 %v391_v54, 0.0 }
 0x1ce   :  { %v404_v59 = vmax.f32 %v386_v56, 0.0  ;;  %v581_v60 = vpop.f32.mrb[2].mxu1 }
 0x1cf   :  { %v401_v62 = vadd.f32 %v581_v60, %v305_v58  ;;  %v395_v63 = vpop.f32.mrb[3].mxu1 }
 0x1d0   :  { %v616_v0 = vpack.c.bf16 %v405_v57, %v404_v59  ;;  %v396_v1 = vadd.f32 %v395_v63, %v300_v61 }
 0x1d1   :  { %v407_v2 = vmax.f32 %v401_v62, 0.0 }
 0x1d2   :  { %v406_v3 = vmax.f32 %v396_v1, 0.0  ;;  %617 = vmatpush3.bf16.msra.mxu1 %v616_v0 }
 0x1d3   :  { %618 = vmatprep.subr.bf16.mxu1 %v659_v49 }
 0x1d4   :  { %v619_v4 = vpack.c.bf16 %v407_v2, %v406_v3 }
 0x1d6   :  { %620 = vmatpush3.bf16.msra.mxu1 %v619_v4 }
 0x1d9   :  { %591 = vmatmul.mubr.msk.f32.vlgmr.msra.gmra.mrb[4].mxu1 %vm47_vm0, %v408_v5 }
 0x2ac   :  { %v484_v7 = vpop.f32.mrb[4].mxu1 }
 0x2ad   :  { %v485_v8 = vadd.f32 %v484_v7, %v413_v6  ;;  %v592_v9 = vpop.f32.mrb[5].mxu1 }
 0x2af   :  { %488 = vst [vmem:[#allocation2] sm:$0xff] %v485_v8 }
 0x2b0   :  { %644 = shalt.err (!%p641_p4)
}
 0x2b1   :  { %s645_s7 = scalar_lea.hbm %s831_s9, 128 }
 0x2b2   :  { %p646_p5 = scmp.ne.s32.totalorder %s831_s9, %s645_s7  ;;  %p649_p6 = scmp.lt.u32.totalorder %s645_s7, %s831_s9 }
 0x2b4   :  { %p651_p7 = pnand %p649_p6, %p646_p5 }
 0x2b6   :  { %654 = shalt.err (!%p651_p7)
}
 0x2b7   :  { %498 = dma.vmem_to_hbm [thread:$0]  %s496_s4, 128, %s831_s9, [#allocation3]  }
 0x2b8   :  { %655 = dma.done.wait [#allocation3], 128  }
 0x2b9   :  { %656 = vsyncadd [#allocation3], 4294967168 }
 0x2ba   :  { %502 = vsyncpa [#allocation3], 1 }

</bundles_post_ra>
